<compile_context>
chip_gen: v7x
topology: tpu7x:2x2x1
jax: 0.10.0
libtpu: 0.0.40
codegen_flags: <defaults>
</compile_context>

<pallas_src>
import functools

import jax
import jax.numpy as jnp
from jax.experimental import pallas as pl
from jax.experimental.pallas import tpu as pltpu


MAX_TOKENS_PER_TILE = 128   # rows gathered per grid step (multiple of 8)
DMA_WINDOW = 8              # in-flight row DMAs per grid step


def _round_up(x, m):
    return ((x + m - 1) // m) * m


def _pick_token_tile(n):
    """Tokens per grid step: multiple of 8, and >= 2 tiles when possible (v7x)."""
    t = min(MAX_TOKENS_PER_TILE, _round_up(n, 8))
    if n > 8 and _round_up(n, t) // t < 2:
        t = _round_up((n + 1) // 2, 8)
    return max(t, 8)


def _gather_tile_kernel(ids_ref, w_hbm, out_ref, sem, *,
                        tokens_per_tile, max_norm, norm_type):
    """Gather `tokens_per_tile` weight rows into one (T, D) output tile.

    ids_ref : SMEM int32 [n_pad]   (scalar-prefetched flat token ids)
    w_hbm   : HBM  [V, D]          (embedding table, row-gathered via DMA)
    out_ref : VMEM [T, D]          (output tile for grid step i)
    sem     : DMA semaphores [W]
    """
    tile = pl.program_id(0)
    base = tile * tokens_per_tile
    w = DMA_WINDOW if tokens_per_tile >= DMA_WINDOW else tokens_per_tile

    def _start(j):
        row = ids_ref[base + j]
        pltpu.make_async_copy(
            w_hbm.at[pl.ds(row, 1), :],
            out_ref.at[pl.ds(j, 1), :],
            sem.at[j % w]).start()

    def _prime(j, carry):
        _start(j)
        return carry

    jax.lax.fori_loop(0, w, _prime, 0)

    def _drain(j, carry):
        # Wait for row-copy j (the src slice only fixes the transfer shape).
        pltpu.make_async_copy(
            w_hbm.at[pl.ds(0, 1), :],
            out_ref.at[pl.ds(j, 1), :],
            sem.at[j % w]).wait()

        @pl.when(j + w < tokens_per_tile)
        def _():
            _start(j + w)

        return carry

    jax.lax.fori_loop(0, tokens_per_tile, _drain, 0)

    if max_norm is not None:
        x = out_ref[...].astype(jnp.float32)
        if norm_type == 2.0:
            nrm = jnp.sqrt(jnp.sum(x * x, axis=-1, keepdims=True))
        elif norm_type == 1.0:
            nrm = jnp.sum(jnp.abs(x), axis=-1, keepdims=True)
        else:
            nrm = jnp.sum(jnp.abs(x) ** norm_type, axis=-1,
                          keepdims=True) ** (1.0 / norm_type)
        scale = jnp.where(nrm > max_norm, max_norm / (nrm + 1e-7), 1.0)
        out_ref[...] = (x * scale).astype(out_ref.dtype)
        # TODO(synk): PyTorch's F.embedding(max_norm=...) also renormalizes the
        # weight rows in place; here only the returned rows are clamped.


def poincare_embedding_forward(indices, weight, *, max_norm=None, norm_type=2.0):
    """Pallas embedding lookup: out[..., :] = weight[indices[...], :]."""
    orig_shape = indices.shape
    V, D = weight.shape

    flat = indices.reshape(-1).astype(jnp.int32)
    n = flat.shape[0]
    if n == 0:
        return jnp.zeros((*orig_shape, D), weight.dtype)

    # TODO(synk): PyTorch raises on out-of-range indices; we clamp instead.
    flat = jnp.clip(flat, 0, V - 1)

    t = _pick_token_tile(n)
    n_pad = _round_up(n, t)
    if n_pad != n:
        flat = jnp.pad(flat, (0, n_pad - n))   # padded ids gather row 0; sliced off
    num_tiles = n_pad // t

    kernel = functools.partial(_gather_tile_kernel, tokens_per_tile=t,
                               max_norm=max_norm, norm_type=norm_type)

    itemsize = jnp.dtype(weight.dtype).itemsize
    cost = pl.CostEstimate(
        flops=0,
        transcendentals=0,
        bytes_accessed=int(2 * n_pad * D * itemsize + n_pad * 4))

    # TODO(synk): for token counts too large for the flat id vector to fit in
    # SMEM, chunk the call (or stream the ids through an SMEM BlockSpec).
    out = pl.pallas_call(
        kernel,
        out_shape=jax.ShapeDtypeStruct((n_pad, D), weight.dtype),
        grid_spec=pltpu.PrefetchScalarGridSpec(
            num_scalar_prefetch=1,
            grid=(num_tiles,),
            in_specs=[pl.BlockSpec(memory_space=pl.ANY)],   # table stays in HBM
            out_specs=pl.BlockSpec((t, D), lambda i, ids: (i, 0)),
            scratch_shapes=[pltpu.SemaphoreType.DMA((min(DMA_WINDOW, t),))],
        ),
        compiler_params=pltpu.CompilerParams(
            dimension_semantics=("parallel",)),
        cost_estimate=cost,
    )(flat, weight)

    return out[:n].reshape(*orig_shape, D)


class PoincareEmbeddingPallas:
    """JAX/Pallas port of the PyTorch PoincareEmbedding module (forward only)."""

    def __init__(self, num_embeddings, embedding_dim, c=1.0, padding_idx=None,
                 max_norm=None, norm_type=2.0, key=None):
        self.num_embeddings = num_embeddings
        self.embedding_dim = embedding_dim
        self.c = c
        self.padding_idx = padding_idx
        self.max_norm = max_norm
        self.norm_type = norm_type
        if key is None:
            key = jax.random.PRNGKey(0)
        # reset_parameters(): uniform_(-0.1, 0.1); padding row zeroed.
        w = jax.random.uniform(key, (num_embeddings, embedding_dim),
                               minval=-0.1, maxval=0.1, dtype=jnp.float32)
        if padding_idx is not None:
            w = w.at[padding_idx].set(0.0)
        self.weight = w

    def __call__(self, indices):
        return poincare_embedding_forward(
            indices, self.weight, max_norm=self.max_norm,
            norm_type=self.norm_type)


if __name__ == "__main__":
    key = jax.random.PRNGKey(0)
    k_w, k_idx, k_idx2 = jax.random.split(key, 3)

    num_embeddings, embedding_dim = 64, 32
    batch, seq = 2, 8

    emb = PoincareEmbeddingPallas(num_embeddings, embedding_dim,
                                  c=1.0, padding_idx=0, key=k_w)

    indices = jax.random.randint(k_idx, (batch, seq), 0, num_embeddings,
                                 dtype=jnp.int32)

    # --- no max_norm: plain gather ----------------------------------------
    out = jax.block_until_ready(emb(indices))
    ref = jnp.take(emb.weight, indices, axis=0)
    assert out.shape == (batch, seq, embedding_dim), out.shape
    assert out.dtype == jnp.float32
    assert jnp.allclose(out, ref, rtol=1e-6, atol=1e-7), "mismatch vs reference"

    # --- uneven token count (exercises padding + 2-tile split) -------------
    idx_odd = jax.random.randint(k_idx2, (3, 5), 0, num_embeddings,
                                 dtype=jnp.int32)
    out_odd = jax.block_until_ready(emb(idx_odd))
    ref_odd = jnp.take(emb.weight, idx_odd, axis=0)
    assert out_odd.shape == (3, 5, embedding_dim), out_odd.shape
    assert jnp.allclose(out_odd, ref_odd, rtol=1e-6, atol=1e-7), \
        "mismatch vs reference (odd shape)"

    # --- max_norm path (output clamp semantics) ----------------------------
    max_norm = 0.25
    out_mn = jax.block_until_ready(
        poincare_embedding_forward(indices, emb.weight,
                                   max_norm=max_norm, norm_type=2.0))
    norms = jnp.linalg.norm(ref, axis=-1, keepdims=True)
    ref_mn = ref * jnp.where(norms > max_norm, max_norm / (norms + 1e-7), 1.0)
    assert jnp.allclose(out_mn, ref_mn, rtol=1e-4, atol=1e-6), \
        "mismatch vs max_norm reference"

    print("KERNEL_OK")
</pallas_src>

<mosaic_0001>
module attributes {stable_mosaic.version = 11 : i64} {
  func.func @_gather_tile_kernel(%arg0: i32, %arg1: memref<16xi32, #tpu.memory_space<smem>>, %arg2: memref<64x32xf32, #tpu.memory_space<any>>, %arg3: memref<8x32xf32, #tpu.memory_space<vmem>>, %arg4: memref<8x!tpu.dma_semaphore, #tpu.memory_space<semaphore_mem>>) attributes {dimension_semantics = [#tpu.dimension_semantics<parallel>], iteration_bounds = array<i64: 2>, scalar_prefetch = 1 : i64, scratch_operands = 1 : i64, tpu.core_type = #tpu.core_type<tc>, window_params = [{}, {transform_indices = @transform_1, window_bounds = array<i64: 8, 32>}]} {
    %c8_i32 = arith.constant 8 : i32
    %0 = arith.muli %arg0, %c8_i32 : i32
    %c0_i32 = arith.constant 0 : i32
    %c8_i32_0 = arith.constant 8 : i32
    %1 = arith.addi %c0_i32, %c8_i32_0 : i32
    %c1_i32 = arith.constant 1 : i32
    scf.for %arg5 = %c0_i32 to %1 step %c1_i32  : i32 {
      %3 = arith.addi %0, %arg5 : i32
      %4 = arith.index_cast %3 : i32 to index
      %5 = memref.load %arg1[%4] : memref<16xi32, #tpu.memory_space<smem>>
      %c8_i32_6 = arith.constant 8 : i32
      %c0_i32_7 = arith.constant 0 : i32
      %6 = arith.cmpi eq, %c8_i32_6, %c0_i32_7 : i32
      %c1_i32_8 = arith.constant 1 : i32
      %7 = arith.select %6, %c1_i32_8, %c8_i32_6 : i32
      %8 = arith.remsi %arg5, %7 : i32
      %c0_i32_9 = arith.constant 0 : i32
      %9 = arith.cmpi ne, %8, %c0_i32_9 : i32
      %c0_i32_10 = arith.constant 0 : i32
      %10 = arith.cmpi slt, %8, %c0_i32_10 : i32
      %c0_i32_11 = arith.constant 0 : i32
      %11 = arith.cmpi slt, %7, %c0_i32_11 : i32
      %12 = arith.xori %10, %11 : i1
      %13 = arith.andi %12, %9 : i1
      %14 = arith.addi %8, %7 : i32
      %15 = arith.select %13, %14, %8 : i32
      %c0_i32_12 = arith.constant 0 : i32
      %16 = tpu.memref_slice %arg2[%5, %c0_i32_12] : memref<64x32xf32, #tpu.memory_space<any>> -> memref<1x32xf32, #tpu.memory_space<any>>
      %c0_i32_13 = arith.constant 0 : i32
      %17 = tpu.memref_slice %arg3[%arg5, %c0_i32_13] : memref<8x32xf32, #tpu.memory_space<vmem>> -> memref<1x32xf32, #tpu.memory_space<vmem>>
      %18 = tpu.memref_slice %arg4[%15] : memref<8x!tpu.dma_semaphore, #tpu.memory_space<semaphore_mem>> -> memref<1x!tpu.dma_semaphore, #tpu.memory_space<semaphore_mem>>
      %19 = tpu.memref_squeeze %18 : memref<1x!tpu.dma_semaphore, #tpu.memory_space<semaphore_mem>> -> memref<!tpu.dma_semaphore, #tpu.memory_space<semaphore_mem>>
      tpu.enqueue_dma source(%16 : memref<1x32xf32, #tpu.memory_space<any>>) target(%17 : memref<1x32xf32, #tpu.memory_space<vmem>>) target_semaphore(%19 : memref<!tpu.dma_semaphore, #tpu.memory_space<semaphore_mem>>)
    }
    %c8_i32_1 = arith.constant 8 : i32
    %c0_i32_2 = arith.constant 0 : i32
    %c8_i32_3 = arith.constant 8 : i32
    %2 = arith.addi %c0_i32_2, %c8_i32_3 : i32
    %c1_i32_4 = arith.constant 1 : i32
    scf.for %arg5 = %c0_i32_2 to %2 step %c1_i32_4  : i32 {
      %c8_i32_6 = arith.constant 8 : i32
      %c0_i32_7 = arith.constant 0 : i32
      %3 = arith.cmpi eq, %c8_i32_6, %c0_i32_7 : i32
      %c1_i32_8 = arith.constant 1 : i32
      %4 = arith.select %3, %c1_i32_8, %c8_i32_6 : i32
      %5 = arith.remsi %arg5, %4 : i32
      %c0_i32_9 = arith.constant 0 : i32
      %6 = arith.cmpi ne, %5, %c0_i32_9 : i32
      %c0_i32_10 = arith.constant 0 : i32
      %7 = arith.cmpi slt, %5, %c0_i32_10 : i32
      %c0_i32_11 = arith.constant 0 : i32
      %8 = arith.cmpi slt, %4, %c0_i32_11 : i32
      %9 = arith.xori %7, %8 : i1
      %10 = arith.andi %9, %6 : i1
      %11 = arith.addi %5, %4 : i32
      %12 = arith.select %10, %11, %5 : i32
      %c0_i32_12 = arith.constant 0 : i32
      %c0_i32_13 = arith.constant 0 : i32
      %13 = tpu.memref_slice %arg2[%c0_i32_12, %c0_i32_13] : memref<64x32xf32, #tpu.memory_space<any>> -> memref<1x32xf32, #tpu.memory_space<any>>
      %c0_i32_14 = arith.constant 0 : i32
      %14 = tpu.memref_slice %arg3[%arg5, %c0_i32_14] : memref<8x32xf32, #tpu.memory_space<vmem>> -> memref<1x32xf32, #tpu.memory_space<vmem>>
      %15 = tpu.memref_slice %arg4[%12] : memref<8x!tpu.dma_semaphore, #tpu.memory_space<semaphore_mem>> -> memref<1x!tpu.dma_semaphore, #tpu.memory_space<semaphore_mem>>
      %16 = tpu.memref_squeeze %15 : memref<1x!tpu.dma_semaphore, #tpu.memory_space<semaphore_mem>> -> memref<!tpu.dma_semaphore, #tpu.memory_space<semaphore_mem>>
      tpu.wait_dma2 semaphore(%16 : memref<!tpu.dma_semaphore, #tpu.memory_space<semaphore_mem>>) src(%13 : memref<1x32xf32, #tpu.memory_space<any>>) dst(%14 : memref<1x32xf32, #tpu.memory_space<vmem>>)
      %c8_i32_15 = arith.constant 8 : i32
      %17 = arith.addi %arg5, %c8_i32_15 : i32
      %c8_i32_16 = arith.constant 8 : i32
      %18 = arith.cmpi slt, %17, %c8_i32_16 : i32
      %19 = arith.extui %18 : i1 to i32
      %c0_i32_17 = arith.constant 0 : i32
      %20 = arith.cmpi ne, %19, %c0_i32_17 : i32
      scf.if %20 {
        %c8_i32_18 = arith.constant 8 : i32
        %21 = arith.addi %arg5, %c8_i32_18 : i32
        %22 = arith.addi %0, %21 : i32
        %23 = arith.index_cast %22 : i32 to index
        %24 = memref.load %arg1[%23] : memref<16xi32, #tpu.memory_space<smem>>
        %c8_i32_19 = arith.constant 8 : i32
        %c0_i32_20 = arith.constant 0 : i32
        %25 = arith.cmpi eq, %c8_i32_19, %c0_i32_20 : i32
        %c1_i32_21 = arith.constant 1 : i32
        %26 = arith.select %25, %c1_i32_21, %c8_i32_19 : i32
        %27 = arith.remsi %21, %26 : i32
        %c0_i32_22 = arith.constant 0 : i32
        %28 = arith.cmpi ne, %27, %c0_i32_22 : i32
        %c0_i32_23 = arith.constant 0 : i32
        %29 = arith.cmpi slt, %27, %c0_i32_23 : i32
        %c0_i32_24 = arith.constant 0 : i32
        %30 = arith.cmpi slt, %26, %c0_i32_24 : i32
        %31 = arith.xori %29, %30 : i1
        %32 = arith.andi %31, %28 : i1
        %33 = arith.addi %27, %26 : i32
        %34 = arith.select %32, %33, %27 : i32
        %c0_i32_25 = arith.constant 0 : i32
        %35 = tpu.memref_slice %arg2[%24, %c0_i32_25] : memref<64x32xf32, #tpu.memory_space<any>> -> memref<1x32xf32, #tpu.memory_space<any>>
        %c0_i32_26 = arith.constant 0 : i32
        %36 = tpu.memref_slice %arg3[%21, %c0_i32_26] : memref<8x32xf32, #tpu.memory_space<vmem>> -> memref<1x32xf32, #tpu.memory_space<vmem>>
        %37 = tpu.memref_slice %arg4[%34] : memref<8x!tpu.dma_semaphore, #tpu.memory_space<semaphore_mem>> -> memref<1x!tpu.dma_semaphore, #tpu.memory_space<semaphore_mem>>
        %38 = tpu.memref_squeeze %37 : memref<1x!tpu.dma_semaphore, #tpu.memory_space<semaphore_mem>> -> memref<!tpu.dma_semaphore, #tpu.memory_space<semaphore_mem>>
        tpu.enqueue_dma source(%35 : memref<1x32xf32, #tpu.memory_space<any>>) target(%36 : memref<1x32xf32, #tpu.memory_space<vmem>>) target_semaphore(%38 : memref<!tpu.dma_semaphore, #tpu.memory_space<semaphore_mem>>)
      } else {
      }
    }
    %c8_i32_5 = arith.constant 8 : i32
    return
  }
  func.func @transform_1(%arg0: i32, %arg1: memref<16xi32, #tpu.memory_space<smem>>) -> (i32, i32) {
    %c0_i32 = arith.constant 0 : i32
    %c0_i32_0 = arith.constant 0 : i32
    return %arg0, %c0_i32 : i32, i32
  }
}

</mosaic_0001>

<bundles_post_ra>
// kernel: tpu_custom_call.1
= control target key start
LH: loop header
LB: loop body
LE: loop exit
PB: predicated region body
PF: predicated region fallthrough
CT: control target
= control target key end

     0   :  { %s654_s0 = inlined_call_operand.vmem [shape: s32[16], index: 0, kind: input, shape index: {}]   ;;  %s655_s1 = inlined_call_operand.vmem [shape: f32[64,32], index: 1, kind: input, shape index: {}]   ;;  %s656_s2 = inlined_call_operand.hbm [shape: f32[16,32], index: 2, kind: output, shape index: {}]  }
   0x1   :  { %s7_s11 = sshll.u32 %s654_s0, 4  ;;  %s8_s11 = int_to_ptr.vmem [resolvable:$true] %s7_s11 }
   0x2   :  { %s438_s12 = scalar_lea.vmem %s8_s11, 16  ;;  %p443_p1 = scmp.lt.s32.totalorder %s8_s11, %s8_s11 }
   0x3   :  { %p439_p0 = scmp.ne.s32.totalorder %s8_s11, %s438_s12  ;;  %p444_p2 = scmp.lt.s32.totalorder %s438_s12, %s438_s12 }
   0x5   :  { %p445_p3 = por %p444_p2, %p443_p1 }
   0x7   :  { %p446_p4 = pnand %p445_p3, %p439_p0 }
   0x9   :  { %449 = shalt.err (!%p446_p4)  }
   0xa   :  { %s526_s13 = smov [#allocation4]  }
   0xb   :  { %10 = dma.vmem_to_smem %s8_s11, 16, %s526_s13, [#allocation3] }
   0xc   :  { %498 = dma.done.wait [#allocation3], 16 }
   0xd   :  { %499 = vsyncadd [#allocation3], 4294967280 }
   0xe   :  { %12 = sfence }
   0xf   :  { %13 = vsyncpa [#allocation6], 0 }
  0x10   :  { %15 = vsyncpa [#allocation6 + $0x1], 0  ;;  %s546_s14 = smov 0   ;;  %s548_s15 = smov 0  }
  0x11   :  { %s550_s0 = smov 0  }
  0x12 LB: > { %s361_s16 = sadd.s32 4294967295, %s516_s0   ;;  %s563_s17 = sadd.s32 1, %s516_s0   ;;  %s516_s0 = sphi %s550_s0, %s661_s0   ;;  %s512_s15 = sphi %s548_s15, %s660_s15   ;;  %s508_s14 = sphi %s546_s14, %s659_s14  }
  0x13   : > { %s24_s18 = ssub.s32 %s516_s0, %s563_s17  ;;  %s27_s19 = sadd.s32 1, %s512_s15 }
  0x14   : > { %p25_p5 = scmp.eq.s32.totalorder %s24_s18, 0  ;;  %p362_p6 = scmp.ne.s32.totalorder %s24_s18, 0 }
  0x15   : > { %p31_p7 = scmp.eq.s32.totalorder %s516_s0, 1  ;;  %p36_p8 = scmp.ne.s32.totalorder %s512_s15, %s508_s14 }
  0x16   : > { %s572_s20 = scalar_select %p25_p5, %s512_s15, %s27_s19  }
  0x17   : > { %p574_p9 = por %p362_p6, %p31_p7  ;;  %p37_p10 = scmp.eq.s32.totalorder %s361_s16, 1 }
  0x18   : > { %p363_p12 = scmp.ge.s32.totalorder %s516_s0, 2 }
  0x19   : > { %p578_p11 = por %p37_p10, %p36_p8  ;;  %s51_s23 = sand.u32 (!%p363_p12), 1, %s512_s15  }
  0x1a   : > { %46 = sbr.rel (%p363_p12) target bundleno = 106 (0x6a), region = 12  ;;  %s365_s24 = sshll.u32 (!%p363_p12), %s516_s0, 3 }
  0x1b   : > { %s364_s25 = sshll.u32 (!%p363_p12), %s51_s23, 3  ;;  %s518_s27 = smov (!%p363_p12), 0  }
  0x1c   : > { %s587_s26 = scalar_lea.vmem (!%p363_p12), [#allocation5], %s364_s25 }
  0x21 LB: >> { %s61_s28 = sadd.s32 %s520_s27, %s365_s24  ;;  %p63_p13 = scmp.lt.s32.totalorder %s520_s27, 0  ;;  %s520_s27 = sphi %s518_s27, %s60_s27  }
  0x22   : >> { %s62_s29 = sld [smem:[#allocation4 + %s61_s28]]  ;;  %s64_s30 = ssub.s32 0, %s520_s27 }
  0x23   : >> { %s366_s3 = smin.u32 %s520_s27, %s64_s30  ;;  %s76_s6 = scalar_lea.vmem %s587_s26, %s520_s27 [#allocation5] }
  0x24   : >> { %s66_s4 = sand.u32 7, %s366_s3  }
  0x25   : >> { %s67_s5 = ssub.s32 0, %s66_s4 }
  0x26   : >> { %s663_s5 = smov (!%p63_p13, %s67_s5), %s66_s4 }
  0x27   : >> { %p368_p0 = scmp.lt.s32.totalorder %s663_s5, 0  ;;  %s73_s7 = sadd.s32 8, %s663_s5 }
  0x28   : >> { %s75_s10 = scalar_lea.vmem %s655_s1, %s62_s29 }
  0x29   : >> { %s665_s7 = smov (!%p368_p0, %s73_s7), %s663_s5  ;;  %v95_v0 = vld [vmem:[%s75_s10] sm:$0x1] }
  0x2a   : >> { %96 = vst [vmem:[%s76_s6] sm:$0x1] %v95_v0  ;;  %s77_s11 = scalar_lea.sflag [#allocation2], %s665_s7 }
  0x2b   : >> { %121 = vsyncadd %s77_s11, 16  ;;  %s60_s27 = sadd.s32 1, %s520_s27  }
  0x2c   : >> { %p57_p1 = scmp.ge.s32.totalorder %s60_s27, 8  }
  0x2d   : > { %s595_s12 = smov (%p57_p1), 0  }
  0x2e   : > { %59 = sbr.rel (!%p57_p1) target bundleno = 33 (0x21), region = 156 }
  0x35 LB: >> { %p128_p2 = scmp.lt.s32.totalorder %s524_s12, 0  ;;  %s129_s13 = ssub.s32 0, %s524_s12  ;;  %s524_s12 = sphi %s595_s12, %s127_s12  }
  0x36   : >> { %s369_s16 = smin.u32 %s524_s12, %s129_s13 }
  0x37   : >> { %s131_s18 = sand.u32 7, %s369_s16  }
  0x38   : >> { %s132_s19 = ssub.s32 0, %s131_s18 }
  0x39   : >> { %s667_s19 = smov (!%p128_p2, %s132_s19), %s131_s18 }
  0x3a   : >> { %p371_p3 = scmp.lt.s32.totalorder %s667_s19, 0  ;;  %s138_s25 = sadd.s32 8, %s667_s19 }
  0x3c   : >> { %s669_s25 = smov (!%p371_p3, %s138_s25), %s667_s19 }
  0x3d   : >> { %s140_s27 = scalar_lea.sflag [#allocation2], %s669_s25 }
  0x3e   : >> { %500 = dma.done.wait %s140_s27, 16 }
  0x3f   : >> { %501 = vsyncadd %s140_s27, 4294967280  ;;  %s144_s28 = sadd.s32 8, %s524_s12 }
  0x40   : >> { %p372_p4 = scmp.ge.s32.totalorder %s144_s28, 8 }
  0x41   : >> { %s149_s29 = sadd.s32 (!%p372_p4), %s365_s24, %s144_s28  ;;  %p151_p5 = scmp.lt.s32.totalorder (!%p372_p4), %s144_s28, 0 }
  0x42   : >> { %148 = sbr.rel (%p372_p4) target bundleno = 79 (0x4f), region = 60  ;;  %s150_s30 = sld [smem:[#allocation4 + %s149_s29]] (!%p372_p4) }
  0x43   : >> { %s152_s3 = ssub.s32 (!%p372_p4), 0, %s144_s28  ;;  %s310_s7 = scalar_lea.vmem (!%p372_p4), %s587_s26, %s524_s12 [#allocation5] }
  0x44   : >> { %s373_s4 = smin.u32 (!%p372_p4), %s152_s3, %s144_s28 }
  0x45   : >> { %s154_s5 = sand.u32 (!%p372_p4), 7, %s373_s4  }
  0x46   : >> { %s155_s6 = ssub.s32 (!%p372_p4), 0, %s154_s5 }
  0x48   : >> { %s163_s11 = scalar_lea.vmem (!%p372_p4), %s655_s1, %s150_s30 }
  0x49   : >> { %s671_s6 = smov (!%p151_p5, %s155_s6), %s154_s5  ;;  %v183_v1 = vld [vmem:[%s163_s11] sm:$0x1] }
  0x4a   : >> { %p375_p6 = scmp.lt.s32.totalorder %s671_s6, 0  ;;  %s161_s8 = sadd.s32 8, %s671_s6  ;;  %377 = vst [vmem:[%s310_s7 + $0x8] sm:$0x1] %v183_v1 }
  0x4c   : >> { %s673_s8 = smov (!%p375_p6, %s161_s8), %s671_s6 }
  0x4d   : >> { %s165_s13 = scalar_lea.sflag [#allocation2], %s673_s8 }
  0x4e   : >> { %209 = vsyncadd %s165_s13, 16 }
  0x4f PF: >> { %s127_s12 = sadd.s32 1, %s524_s12  }
  0x50   : >> { %p124_p7 = scmp.ge.s32.totalorder %s127_s12, 8  }
  0x51   : > { %s379_s16 = sshll.u32 (%p124_p7), %s516_s0, 7  ;;  %s224_s27 = sshll.u32 (%p124_p7), %s587_s26, 4  ;;  %s225_s27 = int_to_ptr.vmem [resolvable:$true] %s224_s27 }
  0x52   : > { %126 = sbr.rel (!%p124_p7) target bundleno = 53 (0x35), region = 167  ;;  %s618_s25 = scalar_lea.hbm (%p124_p7), %s656_s2, %s379_s16 }
  0x53   : > { %s211_s28 = scalar_lea.sflag (%p124_p7), [#allocation6], %s51_s23  ;;  %s450_s29 = scalar_lea.vmem (%p124_p7), %s225_s27, 128 }
  0x54   : > { %p451_p8 = scmp.ne.s32.totalorder (%p124_p7), %s225_s27, %s450_s29  ;;  %s527_s12 = smov (%p124_p7), [#allocation5]  }
  0x55   : > { %s454_s24 = sshll.u32 (%p124_p7), %s527_s12, 4  ;;  %s455_s24 = int_to_ptr.vmem [resolvable:$false] %s454_s24 }
  0x56   : > { %p452_p10 = pnand (%p124_p7), %p451_p8, %p574_p9  ;;  %s456_s30 = scalar_lea.vmem (%p124_p7), %s455_s24, 256 }
  0x57   : > { %p457_p13 = scmp.lt.s32.totalorder (%p124_p7), %s225_s27, %s455_s24  ;;  %p458_p0 = scmp.lt.s32.totalorder (%p124_p7), %s456_s30, %s450_s29 }
  0x58   : > { %p453_p12 = pneg (%p124_p7), %p452_p10 }
  0x59   : > { %p459_p1 = por %p458_p0, %p457_p13 }
  0x5b   : > { %p460_p2 = pnand %p459_p1, %p453_p12 }
  0x5d   : > { %463 = shalt.err (!%p460_p2)
}
  0x5e   : > { %s464_s23 = scalar_lea.hbm %s618_s25, 128  ;;  %s468_s4 = scalar_lea.hbm %s656_s2, 256 }
  0x5f   : > { %p465_p3 = scmp.ne.s32.totalorder %s618_s25, %s464_s23  ;;  %p469_p6 = scmp.lt.u32.totalorder %s618_s25, %s656_s2 }
  0x60   : > { %p470_p7 = scmp.lt.u32.totalorder %s468_s4, %s464_s23  ;;  %p472_p10 = scmp.lt.u32.totalorder %s464_s23, %s618_s25 }
  0x61   : > { %p466_p4 = pnand %p465_p3, %p574_p9 }
  0x62   : > { %p471_p8 = por %p470_p7, %p469_p6 }
  0x63   : > { %p467_p5 = pneg %p466_p4 }
  0x64   : > { %p473_p12 = por %p472_p10, %p471_p8 }
  0x66   : > { %p474_p13 = pnand %p473_p12, %p467_p5 }
  0x68   : > { %477 = shalt.err (!%p474_p13)
}
  0x69   : > { %390 = dma.vmem_to_hbm [thread:$0]  (%p574_p9), %s225_s27, 128, %s618_s25, %s211_s28  }
  0x6a PF: > { %p396_p0 = scmp.ge.s32.totalorder %s516_s0, 1  ;;  %s236_s7 = sand.u32 1, %s508_s14  }
  0x6b   : > { %s237_s8 = scalar_lea.sflag [#allocation6], %s236_s7 }
  0x6c   : > { %p393_p1 = pnand %p396_p0, %p578_p11 }
  0x6e   : > { %503 = dma.done.wait (!%p393_p1), %s237_s8, 128  }
  0x6f   : > { %505 = vsyncadd (!%p393_p1), %s237_s8, 4294967168  ;;  %p18_p2 = scmp.ge.s32.totalorder %s563_s17, 3   ;;  %s659_s14 = smov %s512_s15 }
  0x70   : > { %s660_s15 = smov %s572_s20  ;;  %s661_s0 = smov %s563_s17 }
  0x71   :  { %20 = sbr.rel (!%p18_p2) target bundleno = 18 (0x12), region = 178 }
  0x78   :  { %242 = vsyncpa [#allocation6], 1 }
  0x79   :  { %244 = vsyncpa [#allocation6 + $0x1], 1 }
  0x7a   :  { %245 = vsyncmov [#allocation2] }
  0x7d   :  { %s246_s0 = vpop.sfrf %245 }
  0x7e   :  { %p382_p9 = scmp.ne.s32.totalorder %s246_s0, 0 }
  0x80   :  { %250 = shalt.err (%p382_p9)  }
  0x81   :  { %252 = vsyncmov [#allocation2 + $0x1] }
  0x84   :  { %s253_s21 = vpop.sfrf %252 }
  0x85   :  { %p383_p11 = scmp.ne.s32.totalorder %s253_s21, 0 }
  0x87   :  { %257 = shalt.err (%p383_p11)  }
  0x88   :  { %259 = vsyncmov [#allocation2 + $0x2] }
  0x8b   :  { %s260_s22 = vpop.sfrf %259 }
  0x8c   :  { %p384_p3 = scmp.ne.s32.totalorder %s260_s22, 0 }
  0x8e   :  { %264 = shalt.err (%p384_p3)  }
  0x8f   :  { %266 = vsyncmov [#allocation2 + $0x3] }
  0x92   :  { %s267_s9 = vpop.sfrf %266 }
  0x93   :  { %p385_p4 = scmp.ne.s32.totalorder %s267_s9, 0 }
  0x95   :  { %271 = shalt.err (%p385_p4)  }
  0x96   :  { %273 = vsyncmov [#allocation2 + $0x4] }
  0x99   :  { %s274_s17 = vpop.sfrf %273 }
  0x9a   :  { %p386_p5 = scmp.ne.s32.totalorder %s274_s17, 0 }
  0x9c   :  { %278 = shalt.err (%p386_p5)  }
  0x9d   :  { %280 = vsyncmov [#allocation2 + $0x5] }
  0xa0   :  { %s281_s1 = vpop.sfrf %280 }
  0xa1   :  { %p387_p6 = scmp.ne.s32.totalorder %s281_s1, 0 }
  0xa3   :  { %285 = shalt.err (%p387_p6)  }
  0xa4   :  { %287 = vsyncmov [#allocation2 + $0x6] }
  0xa7   :  { %s288_s2 = vpop.sfrf %287 }
  0xa8   :  { %p388_p7 = scmp.ne.s32.totalorder %s288_s2, 0 }
  0xaa   :  { %292 = shalt.err (%p388_p7)  }
  0xab   :  { %294 = vsyncmov [#allocation2 + $0x7] }
  0xae   :  { %s295_s14 = vpop.sfrf %294 }
  0xaf   :  { %p389_p8 = scmp.ne.s32.totalorder %s295_s14, 0 }
  0xb1   :  { %299 = shalt.err (%p389_p8)  }

</bundles_post_ra>
